<compile_context>
chip_gen: v7x
topology: tpu7x:2x2x1
jax: 0.10.0
libtpu: 0.0.40
codegen_flags: <defaults>
</compile_context>

<pallas_src>
import functools

import jax
import jax.numpy as jnp
from jax.experimental import pallas as pl
from jax.experimental.pallas import tpu as pltpu


# ----------------------------------------------------------------------------
# helpers
# ----------------------------------------------------------------------------
def _round_up(a, b):
    return (a + b - 1) // b * b


def _cdiv(a, b):
    return (a + b - 1) // b


def _pick_tile(dim, unit, cap):
    """Largest multiple of `unit` that divides `dim` and is <= cap."""
    best = unit
    t = unit
    while t <= min(dim, cap):
        if dim % t == 0:
            best = t
        t += unit
    return best


def _vmem_budget_bytes():
    """Generation-aware VMEM budget: ~75% of physical per-core VMEM
    (~48 MiB on v7x's 64 MiB, ~96 MiB on v5e/v6e's 128 MiB), with a
    conservative 48 MiB fallback if the query is unavailable."""
    try:
        cap = int(pltpu.get_tpu_info().vmem_capacity_bytes)
    except Exception:
        cap = 64 * 1024 * 1024
    return max(int(cap * 0.75), 16 * 1024 * 1024)


# ----------------------------------------------------------------------------
# kernel: dense GEMM over the compacted (already k-sparse-gathered) K dim
# ----------------------------------------------------------------------------
def _ksparse_gemm_kernel(x_ref, w_ref, b_ref, o_ref, *scratch):
    """One (tm, tn) output tile, accumulated over the compacted-K grid axis.

    x_ref: (tm, tk)   gathered activations (mxu dtype)
    w_ref: (tk, tn)   gathered weight rows, (in, out) layout (mxu dtype)
    b_ref: (1, tn)    bias (f32), block index depends only on j -> resident
    o_ref: (tm, tn)   output tile
    scratch: optional (tm, tn) f32 accumulator; omitted when o_ref is f32 and
             accumulation happens directly in the resident output block.
    """
    acc_ref = scratch[0] if scratch else o_ref
    kk = pl.program_id(2)

    @pl.when(kk == 0)
    def _init():
        acc_ref[...] = jnp.zeros_like(acc_ref)

    acc_ref[...] += jnp.dot(x_ref[...], w_ref[...],
                            preferred_element_type=jnp.float32)

    @pl.when(kk == pl.num_programs(2) - 1)
    def _finalize():
        o_ref[...] = (acc_ref[...] + b_ref[...]).astype(o_ref.dtype)


# ----------------------------------------------------------------------------
# one-time parameter preparation (hoisted out of the forward path)
# ----------------------------------------------------------------------------
def prepare_ksparse_params(weight, bias, *, mxu_dtype=jnp.bfloat16):
    """Transpose + pad + store the weight at MXU dtype, once.

    weight: (out_features, in_features)   (PyTorch convention)
    bias:   (out_features,)

    Returns:
      w_t:    (in_features + 1, n_pad) mxu_dtype, W.T with lane-dim padding;
              row `in_features` is all zeros (gather target for padded slots).
      bias_p: (1, n_pad) float32.
    """
    out_features, in_features = weight.shape
    n_pad = _round_up(out_features, 128)
    w_t = jnp.zeros((in_features + 1, n_pad), mxu_dtype)
    w_t = w_t.at[:in_features, :out_features].set(
        jnp.asarray(weight).T.astype(mxu_dtype))
    bias_p = jnp.zeros((1, n_pad), jnp.float32)
    bias_p = bias_p.at[0, :out_features].set(
        jnp.asarray(bias).astype(jnp.float32))
    return w_t, bias_p


# ----------------------------------------------------------------------------
# forward
# ----------------------------------------------------------------------------
@functools.partial(
    jax.jit,
    static_argnames=("k", "out_features", "tile_m", "tile_n", "tile_k"))
def ksparse_linear(x, w_t, bias_p, feature_importance, *, k, out_features,
                   tile_m=None, tile_n=None, tile_k=None):
    """Forward of KSparseLinear.

    x:                  (batch, in_features)
    w_t, bias_p:        from prepare_ksparse_params
    feature_importance: (in_features,)
    """
    batch, in_features = x.shape
    assert w_t.shape[0] == in_features + 1, "w_t must come from prepare_ksparse_params"
    n_pad = w_t.shape[1]
    mxu_dtype = w_t.dtype
    out_dtype = x.dtype
    out_itemsize = jnp.dtype(out_dtype).itemsize
    mxu_itemsize = jnp.dtype(mxu_dtype).itemsize

    # ---- top-k feature selection (tiny O(in_features) glue, plain JAX) -----
    _, top_idx = jax.lax.top_k(jnp.abs(feature_importance), k)
    top_idx = jnp.sort(top_idx)                 # gather locality / determinism

    # ---- tile sizes ---------------------------------------------------------
    tk = tile_k if tile_k is not None else min(_round_up(k, 128), 1024)
    assert tk % 128 == 0
    k_pad = _round_up(k, tk)

    tn = tile_n if tile_n is not None else _pick_tile(n_pad, 128, 1024)
    assert tn % 128 == 0 and n_pad % tn == 0
    tm = tile_m if tile_m is not None else min(_round_up(batch, 16), 256)
    assert tm % 8 == 0

    vmem_budget = _vmem_budget_bytes()

    def _tiles_bytes(tm_, tn_, tk_):
        acc = 0 if out_dtype == jnp.float32 else tm_ * tn_ * 4
        return (2 * tm_ * tk_ * mxu_itemsize        # x tiles (double-buffered)
                + 2 * tk_ * tn_ * mxu_itemsize      # W tiles (double-buffered)
                + 2 * tm_ * tn_ * out_itemsize      # output tiles
                + 2 * tn_ * 4                       # bias tile
                + acc)

    # Shrink toward the per-generation budget (rarely triggers at these sizes).
    while (_tiles_bytes(tm, tn, tk) > vmem_budget and tn > 128
           and (tn // 2) % 128 == 0):
        tn //= 2
    while (_tiles_bytes(tm, tn, tk) > vmem_budget and tm > 8
           and (tm // 2) % 8 == 0):
        tm //= 2

    # v7x megacore: ensure >= 2 blocks on a parallel axis so both TensorCores
    # get work (harmless on single-core v5e/v6e).
    for _ in range(4):
        if _cdiv(batch, tm) * (n_pad // tn) >= 2:
            break
        if tn > 128 and (tn // 2) % 128 == 0:
            tn //= 2
        elif tm > 8 and (tm // 2) % 8 == 0:
            tm //= 2
        else:
            break

    m_pad = _round_up(batch, tm)

    # ---- k-sparse gather: only the k selected features reach the kernel ----
    # Padded slots point at row `in_features` of w_t (all zeros), so their
    # contribution is exactly zero; x's padded columns are filled with 0.
    if k_pad != k:
        idx = jnp.concatenate(
            [top_idx, jnp.full((k_pad - k,), in_features, top_idx.dtype)])
    else:
        idx = top_idx
    w_g = jnp.take(w_t, idx, axis=0,
                   indices_are_sorted=True)                  # (k_pad, n_pad)
    x_c = jnp.take(x, idx, axis=1, mode="fill", fill_value=0,
                   indices_are_sorted=True).astype(mxu_dtype)  # (batch, k_pad)
    if m_pad != batch:
        x_c = jnp.pad(x_c, ((0, m_pad - batch), (0, 0)))

    grid = (m_pad // tm, n_pad // tn, k_pad // tk)

    # f32 outputs accumulate directly into the resident output block; narrow
    # output dtypes keep a dedicated f32 VMEM accumulator.
    scratch_shapes = ([] if out_dtype == jnp.float32
                      else [pltpu.VMEM((tm, tn), jnp.float32)])

    cost = pl.CostEstimate(
        flops=2 * m_pad * n_pad * k_pad,
        bytes_accessed=int((m_pad * k_pad + k_pad * n_pad) * mxu_itemsize
                           + m_pad * n_pad * out_itemsize + n_pad * 4),
        transcendentals=0)

    out_p = pl.pallas_call(
        _ksparse_gemm_kernel,
        out_shape=jax.ShapeDtypeStruct((m_pad, n_pad), out_dtype),
        grid_spec=pltpu.PrefetchScalarGridSpec(
            num_scalar_prefetch=0,
            grid=grid,
            in_specs=[
                pl.BlockSpec((tm, tk), lambda i, j, kk: (i, kk)),   # x (compact)
                pl.BlockSpec((tk, tn), lambda i, j, kk: (kk, j)),   # W rows (in,out)
                pl.BlockSpec((1, tn), lambda i, j, kk: (0, j)),     # bias (per-j)
            ],
            out_specs=pl.BlockSpec((tm, tn), lambda i, j, kk: (i, j)),
            scratch_shapes=scratch_shapes,
        ),
        compiler_params=pltpu.CompilerParams(
            dimension_semantics=("parallel", "parallel", "arbitrary"),
            vmem_limit_bytes=int(vmem_budget)),
        cost_estimate=cost,
    )(x_c, w_g, bias_p)

    return out_p[:batch, :out_features]


# ----------------------------------------------------------------------------
# parameter init mimicking KSparseLinear.reset_parameters
# ----------------------------------------------------------------------------
def init_params(key, in_features, out_features):
    kw, kf = jax.random.split(key)
    # kaiming_uniform_ (a=0, fan_in): bound = sqrt(6 / fan_in)
    bound = jnp.sqrt(6.0 / in_features)
    weight = jax.random.uniform(
        kw, (out_features, in_features), jnp.float32, -bound, bound)
    bias = jnp.zeros((out_features,), jnp.float32)
    feature_importance = 0.01 * jax.random.normal(kf, (in_features,), jnp.float32)
    return weight, bias, feature_importance


def _ref_masked_bf16(x, weight, bias, mask):
    """Matched reference: bf16 MXU inputs, f32 accumulation."""
    masked = x * mask[None, :]
    return jax.lax.dot_general(
        masked.astype(jnp.bfloat16), weight.astype(jnp.bfloat16),
        dimension_numbers=(((1,), (1,)), ((), ())),
        preferred_element_type=jnp.float32) + bias[None, :]


if __name__ == "__main__":
    key = jax.random.PRNGKey(0)
    k_x, k_p = jax.random.split(key)

    batch, in_features, out_features, k = 16, 384, 256, 48

    x = jax.random.normal(k_x, (batch, in_features), jnp.float32)
    weight, bias, feature_importance = init_params(k_p, in_features, out_features)

    # One-time (hoisted) prep: transpose + pad + bf16-at-rest.
    w_t, bias_p = prepare_ksparse_params(weight, bias)

    # --- run 1: default tiles, single compacted-K block ---------------------
    out = ksparse_linear(x, w_t, bias_p, feature_importance,
                         k=k, out_features=out_features)
    out = jax.block_until_ready(out)
    assert out.shape == (batch, out_features)

    _, idx = jax.lax.top_k(jnp.abs(feature_importance), k)
    mask = jnp.zeros((in_features,), jnp.float32).at[idx].set(1.0)

    ref_bf16 = _ref_masked_bf16(x, weight, bias, mask)
    assert jnp.allclose(out, ref_bf16, atol=2e-4, rtol=2e-4), (
        float(jnp.max(jnp.abs(out - ref_bf16))))

    # Full-f32 module semantics -> loose tolerance (bf16 MXU input rounding).
    ref_f32 = (x * mask[None, :]) @ weight.T + bias[None, :]
    assert jnp.allclose(out, ref_f32, atol=1e-1, rtol=5e-2), (
        float(jnp.max(jnp.abs(out - ref_f32))))

    # --- run 2: k > tile_k exercises the multi-step K accumulation path -----
    k2 = 200
    out2 = ksparse_linear(x, w_t, bias_p, feature_importance,
                          k=k2, out_features=out_features, tile_k=128)
    out2 = jax.block_until_ready(out2)
    _, idx2 = jax.lax.top_k(jnp.abs(feature_importance), k2)
    mask2 = jnp.zeros((in_features,), jnp.float32).at[idx2].set(1.0)
    ref2 = _ref_masked_bf16(x, weight, bias, mask2)
    assert jnp.allclose(out2, ref2, atol=2e-4, rtol=2e-4), (
        float(jnp.max(jnp.abs(out2 - ref2))))

    print("KERNEL_OK")
</pallas_src>

<mosaic_0001>
module attributes {stable_mosaic.version = 11 : i64} {
  func.func @_ksparse_gemm_kernel(%arg0: i32, %arg1: i32, %arg2: i32, %arg3: memref<16x128xbf16, #tpu.memory_space<vmem>>, %arg4: memref<128x128xbf16, #tpu.memory_space<vmem>>, %arg5: memref<1x128xf32, #tpu.memory_space<vmem>>, %arg6: memref<16x128xf32, #tpu.memory_space<vmem>>) attributes {dimension_semantics = [#tpu.dimension_semantics<parallel>, #tpu.dimension_semantics<parallel>, #tpu.dimension_semantics<arbitrary>], iteration_bounds = array<i64: 1, 2, 1>, scalar_prefetch = 0 : i64, scratch_operands = 0 : i64, tpu.core_type = #tpu.core_type<tc>, window_params = [{transform_indices = @transform_0, window_bounds = array<i64: 16, 128>}, {transform_indices = @transform_1, window_bounds = array<i64: 128, 128>}, {transform_indices = @transform_2, window_bounds = array<i64: 1, 128>}, {transform_indices = @transform_3, window_bounds = array<i64: 16, 128>}]} {
    %c0_i32 = arith.constant 0 : i32
    %0 = arith.cmpi eq, %arg2, %c0_i32 : i32
    %1 = arith.extui %0 : i1 to i32
    %c0_i32_0 = arith.constant 0 : i32
    %2 = arith.cmpi ne, %1, %c0_i32_0 : i32
    scf.if %2 {
      %cst_10 = arith.constant 0.000000e+00 : f32
      %12 = vector.broadcast %cst_10 : f32 to vector<16x128xf32>
      %c0_11 = arith.constant 0 : index
      %c0_12 = arith.constant 0 : index
      %13 = vector.load %arg6[%c0_11, %c0_12] : memref<16x128xf32, #tpu.memory_space<vmem>>, vector<16x128xf32>
      tpu.vector_store %arg6[%c0_11, %c0_12], %12 {strides = array<i32>} : memref<16x128xf32, #tpu.memory_space<vmem>>, vector<16x128xf32>,
    } else {
    }
    %c0 = arith.constant 0 : index
    %c0_1 = arith.constant 0 : index
    %3 = vector.load %arg6[%c0, %c0_1] : memref<16x128xf32, #tpu.memory_space<vmem>>, vector<16x128xf32>
    %c0_2 = arith.constant 0 : index
    %c0_3 = arith.constant 0 : index
    %4 = vector.load %arg3[%c0_2, %c0_3] : memref<16x128xbf16, #tpu.memory_space<vmem>>, vector<16x128xbf16>
    %c0_4 = arith.constant 0 : index
    %c0_5 = arith.constant 0 : index
    %5 = vector.load %arg4[%c0_4, %c0_5] : memref<128x128xbf16, #tpu.memory_space<vmem>>, vector<128x128xbf16>
    %cst = arith.constant dense<0.000000e+00> : vector<16x128xf32>
    %6 = tpu.matmul %4, %5, %cst {dimension_numbers = #tpu.dot_dimension_numbers<[1], [0], [0], [1], [0, 0, 1, 1], [], []>} : vector<16x128xbf16>, vector<128x128xbf16>, vector<16x128xf32> -> vector<16x128xf32>
    %7 = arith.addf %3, %6 : vector<16x128xf32>
    %c0_6 = arith.constant 0 : index
    %c0_7 = arith.constant 0 : index
    %8 = vector.load %arg6[%c0_6, %c0_7] : memref<16x128xf32, #tpu.memory_space<vmem>>, vector<16x128xf32>
    tpu.vector_store %arg6[%c0_6, %c0_7], %7 {strides = array<i32>} : memref<16x128xf32, #tpu.memory_space<vmem>>, vector<16x128xf32>,
    %c0_i32_8 = arith.constant 0 : i32
    %9 = arith.cmpi eq, %arg2, %c0_i32_8 : i32
    %10 = arith.extui %9 : i1 to i32
    %c0_i32_9 = arith.constant 0 : i32
    %11 = arith.cmpi ne, %10, %c0_i32_9 : i32
    scf.if %11 {
      %c0_10 = arith.constant 0 : index
      %c0_11 = arith.constant 0 : index
      %12 = vector.load %arg6[%c0_10, %c0_11] : memref<16x128xf32, #tpu.memory_space<vmem>>, vector<16x128xf32>
      %c0_12 = arith.constant 0 : index
      %c0_13 = arith.constant 0 : index
      %13 = vector.load %arg5[%c0_12, %c0_13] : memref<1x128xf32, #tpu.memory_space<vmem>>, vector<1x128xf32>
      %14 = vector.broadcast %13 : vector<1x128xf32> to vector<16x128xf32>
      %15 = arith.addf %12, %14 : vector<16x128xf32>
      %c0_14 = arith.constant 0 : index
      %c0_15 = arith.constant 0 : index
      %16 = vector.load %arg6[%c0_14, %c0_15] : memref<16x128xf32, #tpu.memory_space<vmem>>, vector<16x128xf32>
      tpu.vector_store %arg6[%c0_14, %c0_15], %15 {strides = array<i32>} : memref<16x128xf32, #tpu.memory_space<vmem>>, vector<16x128xf32>,
    } else {
    }
    return
  }
  func.func @transform_0(%arg0: i32, %arg1: i32, %arg2: i32) -> (i32, i32) {
    %c0_i32 = arith.constant 0 : i32
    return %arg0, %arg2 : i32, i32
  }
  func.func @transform_1(%arg0: i32, %arg1: i32, %arg2: i32) -> (i32, i32) {
    %c0_i32 = arith.constant 0 : i32
    return %arg2, %arg1 : i32, i32
  }
  func.func @transform_2(%arg0: i32, %arg1: i32, %arg2: i32) -> (i32, i32) {
    %c0_i32 = arith.constant 0 : i32
    %c0_i32_0 = arith.constant 0 : i32
    return %c0_i32, %arg1 : i32, i32
  }
  func.func @transform_3(%arg0: i32, %arg1: i32, %arg2: i32) -> (i32, i32) {
    %c0_i32 = arith.constant 0 : i32
    return %arg0, %arg1 : i32, i32
  }
}

</mosaic_0001>

<bundles_post_ra>
// kernel: ksparse_linear.1
= control target key start
LH: loop header
LB: loop body
LE: loop exit
PB: predicated region body
PF: predicated region fallthrough
CT: control target
= control target key end

     0   :  { %8 = vsyncpa [#allocation4], 0  ;;  %s991_s0 = inlined_call_operand.vmem [shape: bf16[16,128], index: 0, kind: input, shape index: {}]   ;;  %s992_s1 = inlined_call_operand.vmem [shape: bf16[128,256], index: 1, kind: input, shape index: {}]   ;;  %s993_s2 = inlined_call_operand.vmem [shape: f32[1,256], index: 2, kind: input, shape index: {}]   ;;  %s994_s3 = inlined_call_operand.hbm [shape: f32[16,256], index: 3, kind: output, shape index: {}]  }
   0x1   :  { %10 = vsyncpa [#allocation4 + $0x1], 0  ;;  %s841_s12 = smov 0   ;;  %s843_s13 = smov 0  }
   0x2   :  { %s845_s14 = smov 0   ;;  %s847_s15 = smov 0  }
   0x3   :  { %s849_s16 = smov 0   ;;  %s851_s17 = smov 0  }
   0x4 LB: > { %s613_s18 = sadd.s32 4294967295, %s813_s17   ;;  %s614_s19 = sadd.s32 4294967294, %s813_s17   ;;  %s813_s17 = sphi %s851_s17, %s16_s17   ;;  %s809_s16 = sphi %s849_s16, %s1001_s16   ;;  %s805_s15 = sphi %s847_s15, %s1000_s15   ;;  %s801_s14 = sphi %s845_s14, %s999_s14   ;;  %s797_s13 = sphi %s843_s13, %s998_s13   ;;  %s793_s12 = sphi %s841_s12, %s997_s12  }
   0x5   : > { %s31_s20 = sadd.s32 1, %s809_s16  ;;  %s72_s21 = sadd.s32 1, %s801_s14 }
   0x6   : > { %p33_p0 = scmp.ge.s32.totalorder %s31_s20, 2  ;;  %p79_p1 = scmp.ne.s32.totalorder %s801_s14, %s797_s13 }
   0x7   : > { %p80_p2 = scmp.eq.s32.totalorder %s813_s17, 0  ;;  %p137_p3 = scmp.eq.s32.totalorder %s613_s18, 1 }
   0x8   : > { %s1003_s20 = smov (%p33_p0, %s31_s20), 0  ;;  %p142_p6 = scmp.ne.s32.totalorder %s797_s13, %s793_s12 }
   0x9   : > { %p81_p4 = por %p80_p2, %p79_p1  ;;  %p880_p5 = por %p137_p3, %p79_p1 }
   0xa   : > { %s68_s23 = ssub.s32 %s809_s16, %s1003_s20  ;;  %p143_p8 = scmp.eq.s32.totalorder %s614_s19, 1 }
   0xb   : > { %p70_p7 = scmp.eq.s32.totalorder %s68_s23, 0  ;;  %p617_p10 = scmp.ge.s32.totalorder %s813_s17, 2 }
   0xc   : > { %p891_p9 = por %p143_p8, %p142_p6 }
   0xd   : > { %s889_s24 = scalar_select %p70_p7, %s801_s14, %s72_s21  }
   0xe   : > { %171 = sbr.rel (%p617_p10) target bundleno = 35 (0x23), region = 20 }
  0x15   : > { %174 = sbr.rel (!%p81_p4) target bundleno = 35 (0x23), region = 24  ;;  %s176_s26 = sand.u32 (%p81_p4), 1, %s801_s14  }
  0x16   : > { %s619_s27 = sshll.u32 (%p81_p4), %s809_s16, 2  ;;  %s618_s28 = sshll.u32 (%p81_p4), %s176_s26, 6 }
  0x17   : > { %s903_s4 = scalar_lea.vmem (%p81_p4), %s992_s1, %s619_s27  ;;  %s178_s5 = scalar_lea.vmem (%p81_p4), [#allocation2], %s618_s28 }
  0x18   : > { %v199_v0 = vld [vmem:[%s903_s4] sm:$0xf] (%p81_p4)  ;;  %v201_v1 = vld [vmem:[%s903_s4 + $0x8] sm:$0xf] (%p81_p4)  ;;  %v203_v2 = vld [vmem:[%s903_s4 + $0x10] sm:$0xf] (%p81_p4) }
  0x19   : > { %200 = vst [vmem:[%s178_s5] sm:$0xf] (%p81_p4), %v199_v0  ;;  %202 = vst [vmem:[%s178_s5 + $0x4] sm:$0xf] (%p81_p4), %v201_v1  ;;  %v205_v3 = vld [vmem:[%s903_s4 + $0x18] sm:$0xf] (%p81_p4) }
  0x1a   : > { %v207_v4 = vld [vmem:[%s903_s4 + $0x20] sm:$0xf] (%p81_p4)  ;;  %204 = vst [vmem:[%s178_s5 + $0x8] sm:$0xf] (%p81_p4), %v203_v2  ;;  %206 = vst [vmem:[%s178_s5 + $0xc] sm:$0xf] (%p81_p4), %v205_v3 }
  0x1b   : > { %208 = vst [vmem:[%s178_s5 + $0x10] sm:$0xf] (%p81_p4), %v207_v4  ;;  %v209_v5 = vld [vmem:[%s903_s4 + $0x28] sm:$0xf] (%p81_p4)  ;;  %v211_v6 = vld [vmem:[%s903_s4 + $0x30] sm:$0xf] (%p81_p4) }
  0x1c   : > { %v213_v7 = vld [vmem:[%s903_s4 + $0x38] sm:$0xf]  ;;  %210 = vst [vmem:[%s178_s5 + $0x14] sm:$0xf] %v209_v5  ;;  %212 = vst [vmem:[%s178_s5 + $0x18] sm:$0xf] %v211_v6 }
  0x1d   : > { %214 = vst [vmem:[%s178_s5 + $0x1c] sm:$0xf] %v213_v7  ;;  %v215_v8 = vld [vmem:[%s903_s4 + $0x40] sm:$0xf]  ;;  %v217_v9 = vld [vmem:[%s903_s4 + $0x48] sm:$0xf] }
  0x1e   : > { %v219_v10 = vld [vmem:[%s903_s4 + $0x50] sm:$0xf]  ;;  %216 = vst [vmem:[%s178_s5 + $0x20] sm:$0xf] %v215_v8  ;;  %218 = vst [vmem:[%s178_s5 + $0x24] sm:$0xf] %v217_v9 }
  0x1f   : > { %220 = vst [vmem:[%s178_s5 + $0x28] sm:$0xf] %v219_v10  ;;  %v221_v11 = vld [vmem:[%s903_s4 + $0x58] sm:$0xf]  ;;  %v223_v12 = vld [vmem:[%s903_s4 + $0x60] sm:$0xf] }
  0x20   : > { %v225_v13 = vld [vmem:[%s903_s4 + $0x68] sm:$0xf]  ;;  %222 = vst [vmem:[%s178_s5 + $0x2c] sm:$0xf] %v221_v11  ;;  %224 = vst [vmem:[%s178_s5 + $0x30] sm:$0xf] %v223_v12 }
  0x21   : > { %226 = vst [vmem:[%s178_s5 + $0x34] sm:$0xf] %v225_v13  ;;  %v227_v14 = vld [vmem:[%s903_s4 + $0x70] sm:$0xf]  ;;  %v229_v15 = vld [vmem:[%s903_s4 + $0x78] sm:$0xf] }
  0x22   : > { %228 = vst [vmem:[%s178_s5 + $0x38] sm:$0xf] %v227_v14  ;;  %230 = vst [vmem:[%s178_s5 + $0x3c] sm:$0xf] %v229_v15 }
  0x23 PF: > { %p620_p11 = scmp.ge.s32.totalorder %s813_s17, 1  ;;  %p290_p12 = scmp.lt.s32.totalorder %s813_s17, 3 }
  0x25   : > { %p291_p13 = pnand %p620_p11, %p290_p12 }
  0x26   : > { %s924_s6 = sand.u32 (!%p291_p13), 1, %s797_s13   ;;  %v815_v16 = vmov (!%p291_p13), 0.0   ;;  %vm816_vm0 = vmmov (!%p291_p13), 0   ;;  %v734_v25 = vld [vmem:[%s991_s0] sm:$0xff] (!%p291_p13)   ;;  %p341_p0 = scmp.lt.s32.totalorder (!%p291_p13), %s805_s15, 1 }
  0x27   : > { %294 = sbr.rel (%p291_p13) target bundleno = 305 (0x131), region = 69  ;;  %646 = vmatprep.subr.bf16.mxu0 (!%p291_p13), %v815_v16  ;;  %s621_s7 = sshll.u32 (!%p291_p13), %s924_s6, 6  ;;  %662 = vmatprep.mubr.msk.bf16.mxu0 (!%p291_p13), %vm816_vm0, %v815_v16 }
  0x28   : > { %s299_s8 = scalar_lea.vmem (!%p291_p13), [#allocation2], %s621_s7  ;;  %s622_s18 = sshll.u32 (!%p291_p13), %s924_s6, 4 }
  0x29   : > { %v726_v17 = vld [vmem:[%s299_s8] sm:$0xff] (!%p291_p13)   ;;  %v727_v18 = vld [vmem:[%s299_s8 + $0x8] sm:$0xff] (!%p291_p13)   ;;  %v728_v19 = vld [vmem:[%s299_s8 + $0x10] sm:$0xff] (!%p291_p13)   ;;  %s634_s26 = sshll.u32 (!%p291_p13), %s805_s15, 7  ;;  %s330_s27 = scalar_lea.vmem (!%p291_p13), [#allocation3], %s622_s18 }
  0x2a   : > { %647 = vmatpush3.bf16.msra.mxu0 (!%p291_p13), %v726_v17  ;;  %v729_v20 = vld [vmem:[%s299_s8 + $0x18] sm:$0xff] (!%p291_p13)   ;;  %v730_v21 = vld [vmem:[%s299_s8 + $0x20] sm:$0xff] (!%p291_p13)   ;;  %v731_v22 = vld [vmem:[%s299_s8 + $0x28] sm:$0xff] (!%p291_p13)   ;;  %s503_s28 = sshll.u32 (!%p291_p13), %s330_s27, 4  ;;  %s940_s4 = scalar_lea.hbm (!%p291_p13), %s994_s3, %s634_s26  ;;  %s942_s28 = int_to_ptr.vmem [resolvable:$true] %s503_s28 }
  0x2b   : > { %648 = vmatprep.subr.bf16.mxu0 (!%p291_p13), %v815_v16  ;;  %v732_v23 = vld [vmem:[%s299_s8 + $0x30] sm:$0xff] (!%p291_p13)   ;;  %v733_v24 = vld [vmem:[%s299_s8 + $0x38] sm:$0xff] (!%p291_p13)   ;;  %s735_s5 = scalar_lea.vmem (!%p291_p13), %s942_s28, 256  ;;  %s817_s7 = smov (!%p291_p13), [#allocation3]  }
  0x2c   : > { %p736_p1 = scmp.ne.s32.totalorder (!%p291_p13), %s942_s28, %s735_s5  ;;  %s739_s8 = sshll.u32 (!%p291_p13), %s817_s7, 4  ;;  %s740_s8 = int_to_ptr.vmem [resolvable:$false] %s739_s8 }
  0x2d   : > { %s741_s9 = scalar_lea.vmem (!%p291_p13), %s740_s8, 512  ;;  %p742_p4 = scmp.lt.s32.totalorder (!%p291_p13), %s942_s28, %s740_s8 }
  0x2e   : > { %649 = vmatpush3.bf16.msra.mxu0 %v727_v18  ;;  %s342_s11 = scalar_select %p341_p0, %s805_s15, 1 }
  0x2f   : > { %650 = vmatprep.subr.bf16.mxu0 %v815_v16  ;;  %s488_s15 = scalar_lea.sflag [#allocation4], %s924_s6  ;;  %p737_p2 = pnand %p736_p1, %p880_p5 }
  0x30   : > { %s343_s23 = scalar_lea.vmem %s993_s2, %s342_s11  ;;  %p743_p6 = scmp.lt.s32.totalorder %s741_s9, %s735_s5 }
  0x31   : > { %v632_v27 = vld [vmem:[%s343_s23] ss:$0 sm:$0xff]  ;;  %p738_p3 = pneg %p737_p2 }
  0x32   : > { %651 = vmatpush3.bf16.msra.mxu0 %v728_v19  ;;  %p744_p7 = por %p743_p6, %p742_p4 }
  0x33   : > { %652 = vmatprep.subr.bf16.mxu0 %v815_v16 }
  0x34   : > { %p745_p8 = pnand %p744_p7, %p738_p3 }
  0x36   : > { %653 = vmatpush3.bf16.msra.mxu0 %v729_v20 }
  0x37   : > { %654 = vmatprep.subr.bf16.mxu0 %v815_v16 }
  0x3a   : > { %655 = vmatpush3.bf16.msra.mxu0 %v730_v21 }
  0x3b   : > { %656 = vmatprep.subr.bf16.mxu0 %v815_v16 }
  0x3e   : > { %657 = vmatpush3.bf16.msra.mxu0 %v731_v22 }
  0x3f   : > { %658 = vmatprep.subr.bf16.mxu0 %v815_v16 }
  0x42   : > { %659 = vmatpush3.bf16.msra.mxu0 %v732_v23 }
  0x43   : > { %660 = vmatprep.subr.bf16.mxu0 %v815_v16 }
  0x46   : > { %661 = vmatpush3.bf16.msra.mxu0 %v733_v24 }
  0x49   : > { %663 = vmatmul.mubr.bf16.vlgmr.msra.gmra.mrb[0].mxu0 %v734_v25 }
 0x11c   : > { %v460_v26 = vpop.f32.mrb[0].mxu0 }
 0x11d   : > { %v664_v28 = vpop.f32.mrb[1].mxu0  ;;  %v483_v30 = vadd.f32 %v632_v27, %v460_v26 }
 0x11e   : > { %v463_v29 = vpop.f32.mrb[2].mxu0 }
 0x11f   : > { %v665_v31 = vpop.f32.mrb[3].mxu0  ;;  %485 = vst [vmem:[%s330_s27] sm:$0xff] %v483_v30  ;;  %v484_v32 = vadd.f32 %v632_v27, %v463_v29 }
 0x121   : > { %486 = vst [vmem:[%s330_s27 + $0x8] sm:$0xff] %v484_v32 }
 0x122   : > { %748 = shalt.err (!%p745_p8)
}
 0x123   : > { %s749_s10 = scalar_lea.hbm %s940_s4, 256  ;;  %s753_s19 = scalar_lea.hbm %s994_s3, 512 }
 0x124   : > { %p750_p11 = scmp.ne.s32.totalorder %s940_s4, %s749_s10  ;;  %p754_p0 = scmp.lt.u32.totalorder %s940_s4, %s994_s3 }
 0x125   : > { %p755_p1 = scmp.lt.u32.totalorder %s753_s19, %s749_s10  ;;  %p757_p3 = scmp.lt.u32.totalorder %s749_s10, %s940_s4 }
 0x126   : > { %p751_p12 = pnand %p750_p11, %p880_p5 }
 0x127   : > { %p756_p2 = por %p755_p1, %p754_p0 }
 0x128   : > { %p752_p13 = pneg %p751_p12 }
 0x129   : > { %p758_p4 = por %p757_p3, %p756_p2 }
 0x12b   : > { %p759_p6 = pnand %p758_p4, %p752_p13 }
 0x12d   : > { %762 = shalt.err (!%p759_p6)
}
 0x12e   : > { %s818_s26 = smov 128   ;;  %s819_s27 = smov 256  }
 0x12f   : > { %s820_s29 = smov 8  }
 0x130   : > { %666 = dma.vmem_to_hbm [thread:$0]  (%p880_p5), %s942_s28, 256, %s940_s4, %s488_s15, %s818_s26, %s819_s27, %s820_s29  }
 0x131 PF: > { %s518_s30 = sand.u32 1, %s793_s12   ;;  %p669_p7 = pnand %p617_p10, %p891_p9 }
 0x132   : > { %s519_s5 = scalar_lea.sflag [#allocation4], %s518_s30 }
 0x133   : > { %788 = dma.done.wait (!%p669_p7), %s519_s5, 256  }
 0x134   : > { %790 = vsyncadd (!%p669_p7), %s519_s5, 4294967040  ;;  %s16_s17 = sadd.s32 1, %s813_s17   ;;  %s997_s12 = smov %s797_s13 }
 0x135   : > { %p13_p8 = scmp.ge.s32.totalorder %s16_s17, 4   ;;  %s998_s13 = smov %s801_s14 }
 0x136   : > { %s999_s14 = smov %s889_s24  ;;  %s1000_s15 = smov %s809_s16 }
 0x137   : > { %s1001_s16 = smov %s1003_s20  ;;  %15 = sbr.rel (!%p13_p8) target bundleno = 4 (0x4), region = 127 }
 0x13e   :  { %524 = vsyncpa [#allocation4], 1 }
 0x13f   :  { %526 = vsyncpa [#allocation4 + $0x1], 1 }

</bundles_post_ra>
